<compile_context>
chip_gen: v6e
topology: v6e:2x2x1
jax: 0.10.0
libtpu: 0.0.40
codegen_flags: <defaults>
</compile_context>

<pallas_src>
import math
import functools

import jax
import jax.numpy as jnp
from jax.experimental import pallas as pl
from jax.experimental.pallas import tpu as pltpu


def _round_up(x, m):
    return (x + m - 1) // m * m


# ---------------- generation-aware VMEM budget / row tile ----------------

@functools.lru_cache(maxsize=None)
def _vmem_budget():
    """Returns (vmem_limit_bytes, row_tile) based on the chip's physical VMEM."""
    cap = 128 * 1024 * 1024
    try:
        info = pltpu.get_tpu_info()
        c = getattr(info, "vmem_capacity_bytes", None)
        if c:
            cap = int(c)
    except Exception:
        pass
    if cap >= 128 * 1024 * 1024:              # v5e / v6e: 128 MiB per TensorCore
        return 96 * 1024 * 1024, 1024
    return 40 * 1024 * 1024, 512              # v7x: 64 MiB per TensorCore


def _compiler_params(n_grid_axes=1):
    vmem, _ = _vmem_budget()
    return pltpu.CompilerParams(
        dimension_semantics=("parallel",) * n_grid_axes,
        vmem_limit_bytes=vmem)


# ---------------- single-buffered (resident) BlockSpec helper ----------------

_BUFFERED1_OK = None


def _probe_buffered1():
    """Check (once, on a tiny kernel) that pipeline_mode=pl.Buffered(1) works."""
    try:
        spec = pl.BlockSpec((8, 128), lambda i: (0, 0),
                            pipeline_mode=pl.Buffered(buffer_count=1))
    except Exception:
        return False

    def _k(x_ref, o_ref):
        o_ref[...] = x_ref[...] + 1.0

    try:
        out = pl.pallas_call(
            _k,
            out_shape=jax.ShapeDtypeStruct((16, 128), jnp.float32),
            grid=(2,),
            in_specs=[spec],
            out_specs=pl.BlockSpec((8, 128), lambda i: (i, 0)),
        )(jnp.zeros((8, 128), jnp.float32))
        jax.block_until_ready(out)
        return True
    except Exception:
        return False


def _resident_spec(shape, index_map):
    """BlockSpec for an operand whose block is identical at every grid step
    (constant index_map) -> single buffer saves one full copy of the weight
    in VMEM at zero perf cost."""
    global _BUFFERED1_OK
    if _BUFFERED1_OK is None:
        _BUFFERED1_OK = _probe_buffered1()
    if _BUFFERED1_OK:
        return pl.BlockSpec(shape, index_map,
                            pipeline_mode=pl.Buffered(buffer_count=1))
    return pl.BlockSpec(shape, index_map)


# ------------------------------ linear ------------------------------

def _linear_kernel(x_ref, w_ref, b_ref, o_ref, *, act):
    x = x_ref[...].astype(jnp.bfloat16)
    w = w_ref[...].astype(jnp.bfloat16)
    y = jnp.dot(x, w, preferred_element_type=jnp.float32) + b_ref[...]
    if act == "gelu":
        # BERT gelu (tanh approximation, as in the original BERT TF code)
        c = math.sqrt(2.0 / math.pi)
        y = 0.5 * y * (1.0 + jnp.tanh(c * (y + 0.044715 * y * y * y)))
    elif act == "tanh":
        y = jnp.tanh(y)
    o_ref[...] = y.astype(o_ref.dtype)


def linear(x, w, b, act=None, out_dtype=jnp.bfloat16):
    """y = act(x @ w + b). x: (M, K) bf16/f32, w: (K, N) bf16, b: (N,) f32."""
    M, K = x.shape
    K2, N = w.shape
    assert K == K2
    _, block_m = _vmem_budget()
    tm = min(block_m, _round_up(M, 8))
    Mp = _round_up(M, tm)
    pad = Mp - M
    if pad:
        x = jnp.pad(x, ((0, pad), (0, 0)))
    out = pl.pallas_call(
        functools.partial(_linear_kernel, act=act),
        out_shape=jax.ShapeDtypeStruct((Mp, N), out_dtype),
        grid=(Mp // tm,),
        in_specs=[
            pl.BlockSpec((tm, K), lambda i: (i, 0)),
            _resident_spec((K, N), lambda i: (0, 0)),   # weight resident, 1 buffer
            _resident_spec((1, N), lambda i: (0, 0)),   # bias resident, 1 buffer
        ],
        out_specs=pl.BlockSpec((tm, N), lambda i: (i, 0)),
        compiler_params=_compiler_params(1),
    )(x, w, b.reshape(1, N))
    return out[:M] if pad else out


# ------------------ layernorm (+ fused residual) ------------------

def _ln_core(x, g, b, eps):
    mu = jnp.mean(x, axis=-1, keepdims=True)
    xc = x - mu
    var = jnp.mean(xc * xc, axis=-1, keepdims=True)
    return xc * jax.lax.rsqrt(var + eps) * g + b


def _layernorm_kernel(x_ref, g_ref, b_ref, o_ref, *, eps):
    x = x_ref[...].astype(jnp.float32)
    o_ref[...] = _ln_core(x, g_ref[...], b_ref[...], eps).astype(o_ref.dtype)


def _layernorm_res_kernel(x_ref, r_ref, g_ref, b_ref, o_ref, *, eps):
    x = x_ref[...].astype(jnp.float32) + r_ref[...].astype(jnp.float32)
    o_ref[...] = _ln_core(x, g_ref[...], b_ref[...], eps).astype(o_ref.dtype)


def layernorm(x, gamma, beta, residual=None, eps=1e-12, out_dtype=jnp.bfloat16):
    """LayerNorm(x [+ residual]) over last dim. x: (M, H). f32 stats, bf16 out."""
    M, H = x.shape
    _, block_m = _vmem_budget()
    tm = min(block_m, _round_up(M, 8))
    Mp = _round_up(M, tm)
    pad = Mp - M
    xs = [x] if residual is None else [x, residual]
    if pad:
        xs = [jnp.pad(t, ((0, pad), (0, 0))) for t in xs]
    row_spec = pl.BlockSpec((tm, H), lambda i: (i, 0))
    vec_spec = _resident_spec((1, H), lambda i: (0, 0))
    kernel = _layernorm_kernel if residual is None else _layernorm_res_kernel
    out = pl.pallas_call(
        functools.partial(kernel, eps=eps),
        out_shape=jax.ShapeDtypeStruct((Mp, H), out_dtype),
        grid=(Mp // tm,),
        in_specs=[row_spec] * len(xs) + [vec_spec, vec_spec],
        out_specs=row_spec,
        compiler_params=_compiler_params(1),
    )(*xs, gamma.reshape(1, H), beta.reshape(1, H))
    return out[:M] if pad else out


# ------------------------------ attention ------------------------------
# Reads q/k/v head columns straight from the fused (B*S, 3H) QKV buffer and
# writes ctx straight into a (B*S, H) buffer in the layout the output
# projection wants -> no XLA transposes, maximally lane-dense DMAs.

def _attn_kernel(qkv_ref, m_ref, o_ref, *, nH, dh, scale):
    H = nH * dh
    mask = m_ref[0]                                   # (1, S) additive mask, f32
    for h in range(nH):                               # static (unrolled) head loop
        q = qkv_ref[:, h * dh:(h + 1) * dh].astype(jnp.bfloat16)           # (S, dh)
        k = qkv_ref[:, H + h * dh:H + (h + 1) * dh].astype(jnp.bfloat16)
        v = qkv_ref[:, 2 * H + h * dh:2 * H + (h + 1) * dh].astype(jnp.bfloat16)
        s = jax.lax.dot_general(q, k, (((1,), (1,)), ((), ())),
                                preferred_element_type=jnp.float32) * scale  # (S, S)
        s = s + mask
        s = s - jnp.max(s, axis=-1, keepdims=True)
        p = jnp.exp(s)
        l = jnp.sum(p, axis=-1, keepdims=True)
        p = (p * pl.reciprocal(l, approx=True)).astype(jnp.bfloat16)
        o_ref[:, h * dh:(h + 1) * dh] = jnp.dot(
            p, v, preferred_element_type=jnp.float32).astype(o_ref.dtype)


def attention(qkv, mask_add, *, B, S, nH, dh):
    """qkv: (B*S, 3H) fused projection; mask_add: (B, 1, S) additive mask.
    Returns ctx: (B*S, H) bf16, already in hidden-last layout (no transpose)."""
    H = nH * dh
    assert S % 8 == 0, "sequence length must be a multiple of 8"
    return pl.pallas_call(
        functools.partial(_attn_kernel, nH=nH, dh=dh, scale=1.0 / math.sqrt(dh)),
        out_shape=jax.ShapeDtypeStruct((B * S, H), jnp.bfloat16),
        grid=(B,),                                     # one batch (all heads) / step
        in_specs=[
            pl.BlockSpec((S, 3 * H), lambda b: (b, 0)),    # whole fused QKV of batch b
            pl.BlockSpec((1, 1, S), lambda b: (b, 0, 0)),  # shared additive mask
        ],
        out_specs=pl.BlockSpec((S, H), lambda b: (b, 0)),  # lane-dense ctx write
        compiler_params=_compiler_params(1),
    )(qkv, mask_add)


# ------------------ pooler + classifier (fused, tiny) ------------------

def _pool_cls_kernel(x_ref, wp_ref, bp_ref, wc_ref, bc_ref, o_ref):
    x = x_ref[...].astype(jnp.bfloat16)
    pooled = jnp.tanh(
        jnp.dot(x, wp_ref[...].astype(jnp.bfloat16),
                preferred_element_type=jnp.float32) + bp_ref[...])
    logits = jnp.dot(pooled.astype(jnp.bfloat16), wc_ref[...].astype(jnp.bfloat16),
                     preferred_element_type=jnp.float32) + bc_ref[...]
    o_ref[...] = logits.astype(o_ref.dtype)


def pool_and_classify(first_tok, pool_w, pool_b, cls_w, cls_b, num_labels):
    B, H = first_tok.shape
    Np = _round_up(num_labels, 128)                 # lane-dense padded output
    cls_w_p = jnp.zeros((H, Np), cls_w.dtype).at[:, :num_labels].set(cls_w)
    cls_b_p = jnp.zeros((Np,), jnp.float32).at[:num_labels].set(cls_b)
    vmem, _ = _vmem_budget()
    out = pl.pallas_call(
        _pool_cls_kernel,
        out_shape=jax.ShapeDtypeStruct((B, Np), jnp.float32),
        compiler_params=pltpu.CompilerParams(vmem_limit_bytes=vmem),
    )(first_tok, pool_w, pool_b.reshape(1, H), cls_w_p, cls_b_p.reshape(1, Np))
    return out[:, :num_labels]


# ------------------------------ parameter init ------------------------------

def init_params(key, *, vocab, max_pos, type_vocab, H, nH, I, L, num_labels,
                init_range=0.02):
    keys = iter(jax.random.split(key, 64 + 16 * L))

    def rnd(shape, dtype=jnp.bfloat16):             # bert-style fmod(randn) init
        w = jnp.fmod(jax.random.normal(next(keys), shape, jnp.float32), init_range)
        return w.astype(dtype)

    p = {
        "word_emb": rnd((vocab, H), jnp.float32),
        "pos_emb": rnd((max_pos, H), jnp.float32),
        "type_emb": rnd((type_vocab, H), jnp.float32),
        "emb_ln_g": jnp.ones((H,), jnp.float32),
        "emb_ln_b": jnp.zeros((H,), jnp.float32),
        "layers": [],
        "pool_w": rnd((H, H)),
        "pool_b": jnp.zeros((H,), jnp.float32),
        # classifier: torch.fmod(randn, initializer_range), bias = zeros
        "cls_w": rnd((H, num_labels)),
        "cls_b": jnp.zeros((num_labels,), jnp.float32),
    }
    for _ in range(L):
        p["layers"].append({
            "Wqkv": rnd((H, 3 * H)), "bqkv": jnp.zeros((3 * H,), jnp.float32),
            "Wo": rnd((H, H)), "bo": jnp.zeros((H,), jnp.float32),
            "ln1_g": jnp.ones((H,), jnp.float32),
            "ln1_b": jnp.zeros((H,), jnp.float32),
            "Wi": rnd((H, I)), "bi": jnp.zeros((I,), jnp.float32),
            "Wo2": rnd((I, H)), "bo2": jnp.zeros((H,), jnp.float32),
            "ln2_g": jnp.ones((H,), jnp.float32),
            "ln2_b": jnp.zeros((H,), jnp.float32),
        })
    return p


# ------------------------------ model forward ------------------------------

def classification_forward(params, input_ids, segment_ids, input_mask, *, H, nH):
    B, S = input_ids.shape
    dh = H // nH

    # ---- embeddings (gather is XLA glue; layernorm is a Pallas kernel) ----
    pos = jnp.arange(S, dtype=jnp.int32)
    x = (params["word_emb"][input_ids]
         + params["pos_emb"][pos][None, :, :]
         + params["type_emb"][segment_ids])                       # (B, S, H) f32
    x = x.reshape(B * S, H)
    h = layernorm(x, params["emb_ln_g"], params["emb_ln_b"])      # (B*S, H) bf16
    # TODO(synk): embedding dropout is identity (inference / eval mode)

    # additive attention mask: (1 - mask) * -10000 per batch; heads share it
    mask_add = ((1.0 - input_mask.astype(jnp.float32)) * -10000.0)[:, None, :]

    for lp in params["layers"]:
        # fused QKV projection: one matmul; attention reads head columns from it,
        # so there is no reshape/transpose HBM round trip at all.
        qkv = linear(h, lp["Wqkv"], lp["bqkv"])                    # (B*S, 3H) bf16
        ctx = attention(qkv, mask_add, B=B, S=S, nH=nH, dh=dh)     # (B*S, H) bf16
        attn_out = linear(ctx, lp["Wo"], lp["bo"])
        h1 = layernorm(attn_out, lp["ln1_g"], lp["ln1_b"], residual=h)
        inter = linear(h1, lp["Wi"], lp["bi"], act="gelu")
        ffn = linear(inter, lp["Wo2"], lp["bo2"])
        h = layernorm(ffn, lp["ln2_g"], lp["ln2_b"], residual=h1)

    # ---- pooler (dense + tanh on first token) + classifier, fused kernel ----
    first_tok = h.reshape(B, S, H)[:, 0, :]                        # (B, H) bf16
    # TODO(synk): nn.Dropout before classifier is identity (eval mode)
    logits = pool_and_classify(first_tok, params["pool_w"], params["pool_b"],
                               params["cls_w"], params["cls_b"],
                               num_labels=params["cls_b"].shape[0])
    return logits                                                  # (B, num_labels)


# ------------------------------ main ------------------------------

if __name__ == "__main__":
    B, S, H, nH, I, L = 2, 8, 32, 2, 64, 2
    VOCAB, MAX_POS, TYPE_VOCAB, NUM_LABELS = 100, 32, 2, 3

    key = jax.random.PRNGKey(0)
    kp, k1, k2 = jax.random.split(key, 3)

    params = init_params(kp, vocab=VOCAB, max_pos=MAX_POS, type_vocab=TYPE_VOCAB,
                         H=H, nH=nH, I=I, L=L, num_labels=NUM_LABELS)

    input_ids = jax.random.randint(k1, (B, S), 0, VOCAB, dtype=jnp.int32)
    segment_ids = jax.random.randint(k2, (B, S), 0, TYPE_VOCAB, dtype=jnp.int32)
    input_mask = jnp.ones((B, S), dtype=jnp.int32).at[:, S - 2:].set(0)  # pad last 2

    logits = classification_forward(params, input_ids, segment_ids, input_mask,
                                    H=H, nH=nH)
    logits = jax.block_until_ready(logits)

    assert logits.shape == (B, NUM_LABELS), logits.shape
    assert bool(jnp.all(jnp.isfinite(logits)))
    print("KERNEL_OK")
</pallas_src>

<mosaic_0001>
module attributes {stable_mosaic.version = 11 : i64} {
  func.func @_k(%arg0: i32, %arg1: memref<8x128xf32, #tpu.memory_space<vmem>>, %arg2: memref<8x128xf32, #tpu.memory_space<vmem>>) attributes {dimension_semantics = [#tpu.dimension_semantics<arbitrary>], iteration_bounds = array<i64: 2>, scalar_prefetch = 0 : i64, scratch_operands = 0 : i64, tpu.core_type = #tpu.core_type<tc>, window_params = [{pipeline_mode = #tpu.pipeline_mode<synchronous>, transform_indices = @transform_0, window_bounds = array<i64: 8, 128>}, {transform_indices = @transform_1, window_bounds = array<i64: 8, 128>}]} {
    %c0 = arith.constant 0 : index
    %c0_0 = arith.constant 0 : index
    %0 = vector.load %arg1[%c0, %c0_0] : memref<8x128xf32, #tpu.memory_space<vmem>>, vector<8x128xf32>
    %cst = arith.constant 1.000000e+00 : f32
    %1 = vector.broadcast %cst : f32 to vector<8x128xf32>
    %2 = arith.addf %0, %1 : vector<8x128xf32>
    %c0_1 = arith.constant 0 : index
    %c0_2 = arith.constant 0 : index
    %3 = vector.load %arg2[%c0_1, %c0_2] : memref<8x128xf32, #tpu.memory_space<vmem>>, vector<8x128xf32>
    tpu.vector_store %arg2[%c0_1, %c0_2], %2 {strides = array<i32>} : memref<8x128xf32, #tpu.memory_space<vmem>>, vector<8x128xf32>,
    return
  }
  func.func @transform_0(%arg0: i32) -> (i32, i32) {
    %c0_i32 = arith.constant 0 : i32
    %c0_i32_0 = arith.constant 0 : i32
    %c0_i32_1 = arith.constant 0 : i32
    return %c0_i32, %c0_i32_0 : i32, i32
  }
  func.func @transform_1(%arg0: i32) -> (i32, i32) {
    %c0_i32 = arith.constant 0 : i32
    %c0_i32_0 = arith.constant 0 : i32
    return %arg0, %c0_i32 : i32, i32
  }
}

module attributes {stable_mosaic.version = 11 : i64} {
  func.func @_layernorm_kernel(%arg0: i32, %arg1: memref<16x32xf32, #tpu.memory_space<vmem>>, %arg2: memref<1x32xf32, #tpu.memory_space<vmem>>, %arg3: memref<1x32xf32, #tpu.memory_space<vmem>>, %arg4: memref<16x32xbf16, #tpu.memory_space<vmem>>) attributes {dimension_semantics = [#tpu.dimension_semantics<parallel>], iteration_bounds = array<i64: 1>, scalar_prefetch = 0 : i64, scratch_operands = 0 : i64, tpu.core_type = #tpu.core_type<tc>, window_params = [{transform_indices = @transform_0, window_bounds = array<i64: 16, 32>}, {pipeline_mode = #tpu.pipeline_mode<synchronous>, transform_indices = @transform_1, window_bounds = array<i64: 1, 32>}, {pipeline_mode = #tpu.pipeline_mode<synchronous>, transform_indices = @transform_2, window_bounds = array<i64: 1, 32>}, {transform_indices = @transform_3, window_bounds = array<i64: 16, 32>}]} {
    %c0 = arith.constant 0 : index
    %c0_0 = arith.constant 0 : index
    %0 = vector.load %arg1[%c0, %c0_0] : memref<16x32xf32, #tpu.memory_space<vmem>>, vector<16x32xf32>
    %c0_1 = arith.constant 0 : index
    %c0_2 = arith.constant 0 : index
    %1 = vector.load %arg2[%c0_1, %c0_2] : memref<1x32xf32, #tpu.memory_space<vmem>>, vector<1x32xf32>
    %c0_3 = arith.constant 0 : index
    %c0_4 = arith.constant 0 : index
    %2 = vector.load %arg3[%c0_3, %c0_4] : memref<1x32xf32, #tpu.memory_space<vmem>>, vector<1x32xf32>
    %cst = arith.constant dense<0.000000e+00> : vector<16xf32>
    %3 = vector.multi_reduction <add>, %0, %cst [1] : vector<16x32xf32> to vector<16xf32>
    %4 = vector.shape_cast %3 : vector<16xf32> to vector<16x1xf32>
    %cst_5 = arith.constant 3.200000e+01 : f32
    %5 = vector.broadcast %cst_5 : f32 to vector<16x1xf32>
    %6 = arith.divf %4, %5 : vector<16x1xf32>
    %7 = vector.broadcast %6 : vector<16x1xf32> to vector<16x32xf32>
    %8 = arith.subf %0, %7 : vector<16x32xf32>
    %9 = arith.mulf %8, %8 : vector<16x32xf32>
    %cst_6 = arith.constant dense<0.000000e+00> : vector<16xf32>
    %10 = vector.multi_reduction <add>, %9, %cst_6 [1] : vector<16x32xf32> to vector<16xf32>
    %11 = vector.shape_cast %10 : vector<16xf32> to vector<16x1xf32>
    %cst_7 = arith.constant 3.200000e+01 : f32
    %12 = vector.broadcast %cst_7 : f32 to vector<16x1xf32>
    %13 = arith.divf %11, %12 : vector<16x1xf32>
    %cst_8 = arith.constant 9.99999996E-13 : f32
    %14 = vector.broadcast %cst_8 : f32 to vector<16x1xf32>
    %15 = arith.addf %13, %14 : vector<16x1xf32>
    %16 = math.rsqrt %15 : vector<16x1xf32>
    %17 = vector.broadcast %16 : vector<16x1xf32> to vector<16x32xf32>
    %18 = arith.mulf %8, %17 : vector<16x32xf32>
    %19 = vector.broadcast %1 : vector<1x32xf32> to vector<16x32xf32>
    %20 = arith.mulf %18, %19 : vector<16x32xf32>
    %21 = vector.broadcast %2 : vector<1x32xf32> to vector<16x32xf32>
    %22 = arith.addf %20, %21 : vector<16x32xf32>
    %23 = arith.truncf %22 : vector<16x32xf32> to vector<16x32xbf16>
    %c0_9 = arith.constant 0 : index
    %c0_10 = arith.constant 0 : index
    %24 = vector.load %arg4[%c0_9, %c0_10] : memref<16x32xbf16, #tpu.memory_space<vmem>>, vector<16x32xbf16>
    tpu.vector_store %arg4[%c0_9, %c0_10], %23 {strides = array<i32>} : memref<16x32xbf16, #tpu.memory_space<vmem>>, vector<16x32xbf16>,
    return
  }
  func.func @transform_0(%arg0: i32) -> (i32, i32) {
    %c0_i32 = arith.constant 0 : i32
    %c0_i32_0 = arith.constant 0 : i32
    return %arg0, %c0_i32 : i32, i32
  }
  func.func @transform_1(%arg0: i32) -> (i32, i32) {
    %c0_i32 = arith.constant 0 : i32
    %c0_i32_0 = arith.constant 0 : i32
    %c0_i32_1 = arith.constant 0 : i32
    return %c0_i32, %c0_i32_0 : i32, i32
  }
  func.func @transform_2(%arg0: i32) -> (i32, i32) {
    %c0_i32 = arith.constant 0 : i32
    %c0_i32_0 = arith.constant 0 : i32
    %c0_i32_1 = arith.constant 0 : i32
    return %c0_i32, %c0_i32_0 : i32, i32
  }
  func.func @transform_3(%arg0: i32) -> (i32, i32) {
    %c0_i32 = arith.constant 0 : i32
    %c0_i32_0 = arith.constant 0 : i32
    return %arg0, %c0_i32 : i32, i32
  }
}

</mosaic_0001>

<bundles_post_ra>
// kernel: tpu_custom_call.1
= control target key start
LH: loop header
LB: loop body
LE: loop exit
PB: predicated region body
PF: predicated region fallthrough
CT: control target
= control target key end

     0   :  { %6 = vsyncpa [#allocation3], 0  ;;  %s448_s0 = inlined_call_operand.hbm [shape: f32[8,128], index: 0, kind: input, shape index: {}]   ;;  %s449_s1 = inlined_call_operand.hbm [shape: f32[16,128], index: 1, kind: output, shape index: {}]  }
   0x1   :  { %7 = vsyncpa [#allocation4], 0 }
   0x2   :  { %9 = vsyncpa [#allocation4 + $0x1], 0  ;;  %s348_s6 = smov 0   ;;  %s350_s7 = smov 0  }
   0x3   :  { %s352_s8 = smov 0   ;;  %s354_s9 = smov 0  }
   0x4 LB: > { %s369_s10 = sadd.s32 4294967295, %s334_s9   ;;  %s184_s11 = sadd.s32 4294967294, %s334_s9   ;;  %s334_s9 = sphi %s354_s9, %s457_s9   ;;  %s330_s8 = sphi %s352_s8, %s456_s8   ;;  %s326_s7 = sphi %s350_s7, %s455_s7   ;;  %s322_s6 = sphi %s348_s6, %s454_s6  }
   0x5   : > { %s373_s12 = sadd.s32 1, %s334_s9   ;;  %s43_s13 = sadd.s32 1, %s330_s8 }
   0x6   : > { %s40_s14 = ssub.s32 %s334_s9, %s373_s12  ;;  %p53_p0 = scmp.ne.s32.totalorder %s330_s8, %s326_s7 }
   0x7   : > { %p41_p1 = scmp.eq.s32.totalorder %s40_s14, 0  ;;  %p54_p2 = scmp.eq.s32.totalorder %s369_s10, 1 }
   0x8   : > { %p59_p3 = scmp.ne.s32.totalorder %s326_s7, %s322_s6  ;;  %p60_p4 = scmp.eq.s32.totalorder %s184_s11, 1 }
   0x9   : > { %s384_s15 = scalar_select %p41_p1, %s330_s8, %s43_s13  }
   0xa   : > { %p386_p5 = por %p54_p2, %p53_p0  ;;  %p390_p6 = por %p60_p4, %p59_p3 }
   0xb   : > { %p185_p7 = scmp.ge.s32.totalorder %s334_s9, 1  ;;  %p67_p8 = scmp.lt.s32.totalorder %s334_s9, 3 }
   0xc   : > { %s451_s17 = scalar_select %p390_p6, 1, 0 }
   0xd   : > { %p208_p9 = scmp.eq.s32.totalorder %s369_s10, 0  ;;  %p397_p10 = pnand %p185_p7, %p67_p8 }
   0xe   : > { %s336_s19 = smov [#allocation2]  }
   0xf   : > { %s80_s20 = sshll.u32 %s336_s19, 4  ;;  %p200_p11 = pneg %p397_p10  ;;  %s81_s20 = int_to_ptr.vmem [resolvable:$true] %s80_s20 }
  0x10   : > { %s255_s21 = scalar_lea.vmem %s81_s20, 128  ;;  %p263_p3 = scmp.lt.s32.totalorder %s81_s20, %s81_s20 }
  0x11   : > { %p201_p12 = pnand %p208_p9, %p200_p11  ;;  %p256_p0 = scmp.ne.s32.totalorder %s81_s20, %s255_s21 }
  0x12   : > { %p264_p4 = scmp.lt.s32.totalorder %s255_s21, %s255_s21 }
  0x13   : > { %p246_p13 = pneg %p201_p12 }
  0x14   : > { %p265_p6 = por %p264_p4, %p263_p3 }
  0x15   : > { %p258_p1 = pnand %p256_p0, %p246_p13 }
  0x17   : > { %p259_p2 = pneg %p258_p1 }
  0x19   : > { %p266_p7 = pnand %p265_p6, %p259_p2 }
  0x1b   : > { %269 = shalt.err (!%p266_p7)
}
  0x1c   : > { %203 = dma.hbm_to_vmem [thread:$0]  (!%p201_p12), %s448_s0, 128, %s81_s20, [#allocation3]  }
  0x1d   : > { %93 = sbr.rel (%p397_p10) target bundleno = 60 (0x3c), region = 24 }
  0x22   : > { %313 = dma.done.wait (%p208_p9), [#allocation3], 128  }
  0x23   : > { %315 = vsyncadd (%p208_p9), [#allocation3], 4294967168  ;;  %s105_s24 = sand.u32 1, %s326_s7   ;;  %s191_s28 = sshll.u32 %s369_s10, 7  ;;  %v108_v0 = vld [vmem:[#allocation2] sm:$0xff] }
  0x24   : > { %s189_s25 = sshll.u32 %s105_s24, 3  ;;  %v109_v1 = vadd.f32 1.0, %v108_v0  ;;  %s123_s2 = scalar_lea.hbm %s449_s1, %s191_s28 }
  0x25   : > { %s107_s26 = scalar_lea.vmem [#allocation5], %s189_s25  ;;  %s112_s3 = scalar_lea.sflag [#allocation4], %s105_s24 }
  0x26   : > { %s125_s27 = sshll.u32 %s107_s26, 4  ;;  %110 = vst [vmem:[%s107_s26] sm:$0xff] %v109_v1  ;;  %s337_s5 = smov [#allocation5]   ;;  %s126_s27 = int_to_ptr.vmem [resolvable:$true] %s125_s27 }
  0x27   : > { %s270_s4 = scalar_lea.vmem %s126_s27, 128  ;;  %s274_s11 = sshll.u32 %s337_s5, 4  ;;  %s275_s11 = int_to_ptr.vmem [resolvable:$false] %s274_s11 }
  0x28   : > { %p271_p6 = scmp.ne.s32.totalorder %s126_s27, %s270_s4  ;;  %s276_s13 = scalar_lea.vmem %s275_s11, 256 }
  0x29   : > { %p277_p10 = scmp.lt.s32.totalorder %s126_s27, %s275_s11  ;;  %p278_p11 = scmp.lt.s32.totalorder %s276_s13, %s270_s4 }
  0x2a   : > { %p272_p8 = pnand %p271_p6, %p386_p5 }
  0x2b   : > { %p279_p12 = por %p278_p11, %p277_p10 }
  0x2c   : > { %p273_p9 = pneg %p272_p8 }
  0x2e   : > { %p280_p13 = pnand %p279_p12, %p273_p9 }
  0x30   : > { %283 = shalt.err (!%p280_p13)
}
  0x31   : > { %s284_s10 = scalar_lea.hbm %s123_s2, 128  ;;  %s288_s19 = scalar_lea.hbm %s449_s1, 256 }
  0x32   : > { %p285_p0 = scmp.ne.s32.totalorder %s123_s2, %s284_s10  ;;  %p289_p3 = scmp.lt.s32.totalorder %s123_s2, %s449_s1 }
  0x33   : > { %p290_p4 = scmp.lt.s32.totalorder %s288_s19, %s284_s10 }
  0x34   : > { %p286_p1 = pnand %p285_p0, %p386_p5 }
  0x35   : > { %p291_p7 = por %p290_p4, %p289_p3 }
  0x36   : > { %p287_p2 = pneg %p286_p1 }
  0x38   : > { %p292_p6 = pnand %p291_p7, %p287_p2 }
  0x3a   : > { %295 = shalt.err (!%p292_p6)
}
  0x3b   : > { %198 = dma.vmem_to_hbm [thread:$0]  (%p386_p5), %s126_s27, 128, %s123_s2, %s112_s3  }
  0x3c PF: > { %p210_p8 = scmp.ge.s32.totalorder %s334_s9, 2  ;;  %s137_s22 = sand.u32 1, %s322_s6  }
  0x3d   : > { %p453_p9 = scmp.ne.s32.totalorder %s451_s17, 0  ;;  %s138_s23 = scalar_lea.sflag [#allocation4], %s137_s22 }
  0x3f   : > { %p205_p10 = pnand %p210_p8, %p453_p9 }
  0x41   : > { %p206_p11 = pneg %p205_p10 }
  0x43   : > { %317 = dma.done.wait (%p206_p11), %s138_s23, 128  }
  0x44   : > { %319 = vsyncadd (%p206_p11), %s138_s23, 4294967168  ;;  %p12_p12 = scmp.ge.s32.totalorder %s373_s12, 4   ;;  %s454_s6 = smov %s326_s7 }
  0x45   : > { %s455_s7 = smov %s330_s8  ;;  %s456_s8 = smov %s384_s15 }
  0x46   : > { %s457_s9 = smov %s373_s12  ;;  %14 = sbr.rel (!%p12_p12) target bundleno = 4 (0x4), region = 61 }
  0x4b   :  { %143 = vsyncpa [#allocation3], 1 }
  0x4c   :  { %145 = vsyncpa [#allocation3 + $0x1], 1 }
  0x4d   :  { %146 = vsyncpa [#allocation4], 1 }
  0x4e   :  { %148 = vsyncpa [#allocation4 + $0x1], 1 }

// kernel: tpu_custom_call.1
= control target key start
LH: loop header
LB: loop body
LE: loop exit
PB: predicated region body
PF: predicated region fallthrough
CT: control target
= control target key end

     0   :  { %8 = vsyncpa [#allocation3], 0  ;;  %s207_s0 = inlined_call_operand.hbm [shape: f32[16,32], index: 0, kind: input, shape index: {}]   ;;  %s208_s1 = inlined_call_operand.vmem [shape: f32[1,32], index: 1, kind: input, shape index: {}]   ;;  %s209_s2 = inlined_call_operand.vmem [shape: f32[1,32], index: 2, kind: input, shape index: {}]   ;;  %s210_s3 = inlined_call_operand.hbm [shape: bf16[16,32], index: 3, kind: output, shape index: {}]  }
   0x1   :  { %9 = vsyncpa [#allocation4], 0  ;;  %s165_s12 = smov [#allocation2]  }
   0x2   :  { %s15_s13 = sshll.u32 %s165_s12, 4  ;;  %s16_s13 = int_to_ptr.vmem [resolvable:$true] %s15_s13 }
   0x3   :  { %s129_s14 = scalar_lea.vmem %s16_s13, 256  ;;  %p134_p1 = scmp.lt.s32.totalorder %s16_s13, %s16_s13 }
   0x4   :  { %p130_p0 = scmp.ne.s32.totalorder %s16_s13, %s129_s14  ;;  %p135_p2 = scmp.lt.s32.totalorder %s129_s14, %s129_s14 }
   0x6   :  { %p136_p3 = por %p135_p2, %p134_p1 }
   0x8   :  { %p137_p4 = pnand %p136_p3, %p130_p0 }
   0xa   :  { %140 = shalt.err (!%p137_p4)
}
   0xb   :  { %s166_s15 = smov 128   ;;  %s167_s16 = smov 8  }
   0xc   :  { %21 = dma.hbm_to_vmem [thread:$0]  %s207_s0, 256, %s16_s13, [#allocation3], %s166_s15, %s166_s15, %s167_s16  }
   0xd   :  { %161 = dma.done.wait [#allocation3], 256  }
   0xe   :  { %162 = vsyncadd [#allocation3], 4294967040  ;;  %vm33_vm0 = vcmask 261120   ;;  %v29_v0 = vld [vmem:[#allocation2] sm:$0xff]  ;;  %v30_v1 = vld [vmem:[#allocation2 + $0x8] sm:$0xff]  ;;  %vm85_vm1 = vcmask 257024  }
   0xf   :  { %v34_v2 = vsel %vm33_vm0, %v29_v0, 0.0  ;;  %v37_v3 = vsel %vm33_vm0, %v30_v1, 0.0  ;;  %v105_v21 = vld [vmem:[%s208_s1] ss:$0 sm:$0xff]  ;;  %s168_s22 = smov [#allocation5]  }
  0x10   :  { %35 = vadd.xlane.f32.xlu0 %v34_v2  ;;  %v106_v23 = vld [vmem:[%s209_s2] ss:$0 sm:$0xff]  ;;  %s93_s23 = sshll.u32 %s168_s22, 4  ;;  %s94_s23 = int_to_ptr.vmem [resolvable:$true] %s93_s23 }
  0x11   :  { %s141_s1 = scalar_lea.vmem %s94_s23, 128  ;;  %p146_p6 = scmp.lt.s32.totalorder %s94_s23, %s94_s23 }
  0x12   :  { %p142_p5 = scmp.ne.s32.totalorder %s94_s23, %s141_s1  ;;  %p147_p7 = scmp.lt.s32.totalorder %s141_s1, %s141_s1 }
  0x14   :  { %38 = vadd.xlane.f32.xlu0 %v37_v3  ;;  %p148_p8 = por %p147_p7, %p146_p6 }
  0x16   :  { %p149_p9 = pnand %p148_p8, %p142_p5 }
  0x99   :  { %v36_v4 = vpop.xlane.xlu0 %35 }
  0x9a   :  { %v41_v5 = vmul.f32 0.03125, %v36_v4 }
  0x9c   :  { %v43_v6 = vsub.f32 %v29_v0, %v41_v5 }
  0x9d   :  { %v39_v7 = vpop.xlane.xlu0 %38 }
  0x9e   :  { %v42_v8 = vmul.f32 0.03125, %v39_v7  ;;  %v45_v9 = vmul.f32 %v43_v6, %v43_v6 }
  0xa0   :  { %v44_v10 = vsub.f32 %v30_v1, %v42_v8  ;;  %v47_v11 = vsel %vm33_vm0, %v45_v9, 0.0 }
  0xa1   :  { %48 = vadd.xlane.f32.xlu1 %v47_v11 }
  0xa2   :  { %v46_v12 = vmul.f32 %v44_v10, %v44_v10 }
  0xa4   :  { %v50_v13 = vsel %vm33_vm0, %v46_v12, 0.0 }
  0xa5   :  { %51 = vadd.xlane.f32.xlu1 %v50_v13 }
 0x12a   :  { %v49_v14 = vpop.xlane.xlu1 %48 }
 0x12b   :  { %v53_v15 = vmul.f32 0.03125, %v49_v14 }
 0x12d   :  { %v55_v16 = vadd.f32 1e-12, %v53_v15 }
 0x12e   :  { %v52_v17 = vpop.xlane.xlu1 %51 }
 0x12f   :  { %117 = vrsqrt.f32 %v55_v16  ;;  %v54_v18 = vmul.f32 0.03125, %v52_v17 }
 0x131   :  { %v56_v19 = vadd.f32 1e-12, %v54_v18 }
 0x133   :  { %119 = vrsqrt.f32 %v56_v19 }
 0x13c   :  { %v118_v20 = vpop.eup %117 }
 0x13d   :  { %v59_v22 = vmul.f32 %v118_v20, %v43_v6 }
 0x13f   :  { %v67_v24 = vmul.f32 %v105_v21, %v59_v22 }
 0x140   :  { %v120_v25 = vpop.eup %119 }
 0x141   :  { %v60_v26 = vmul.f32 %v120_v25, %v44_v10  ;;  %v75_v27 = vadd.f32 %v106_v23, %v67_v24 }
 0x143   :  { %v68_v28 = vmul.f32 %v105_v21, %v60_v26  ;;  %v109_v29 = vpack.c.bf16 %v75_v27, %v75_v27 }
 0x145   :  { %v76_v30 = vadd.f32 %v106_v23, %v68_v28  ;;  %86 = vst.msk [vmem:[#allocation5] sm:$0xf] %vm85_vm1, %v109_v29 }
 0x147   :  { %v110_v31 = vpack.c.bf16 %v76_v30, %v76_v30 }
 0x149   :  { %87 = vst.msk [vmem:[#allocation5 + $0x4] sm:$0xf] %vm85_vm1, %v110_v31 }
 0x14a   :  { %152 = shalt.err (!%p149_p9)
}
 0x14b   :  { %s169_s2 = smov 64   ;;  %s170_s24 = smov 4  }
 0x14c   :  { %99 = dma.vmem_to_hbm [thread:$0]  %s94_s23, 128, %s210_s3, [#allocation4], %s169_s2, %s169_s2, %s170_s24  }
 0x14d   :  { %163 = dma.done.wait [#allocation4], 128  }
 0x14e   :  { %164 = vsyncadd [#allocation4], 4294967168 }
 0x14f   :  { %103 = vsyncpa [#allocation3], 1 }
 0x150   :  { %104 = vsyncpa [#allocation4], 1 }

</bundles_post_ra>
